<compile_context>
chip_gen: v7x
topology: tpu7x:2x2x1
jax: 0.10.0
libtpu: 0.0.40
codegen_flags: <defaults>
</compile_context>

<pallas_src>
import functools

import jax
import jax.numpy as jnp
from jax import lax
from jax.experimental import pallas as pl
from jax.experimental.pallas import tpu as pltpu


def _feature_distill_kernel(s_ref, t_ref, o_ref,
                            max_sc, berhu_sc, cos_sc, gx_sc, gy_sc,
                            *, n, c, h, w, wb, wc, wg):
    f32 = jnp.float32
    hw = h * w
    p = pl.program_id(0)          # pass index (0: max / cs / grad, 1: BerHu accumulation)
    i = pl.program_id(1)          # sample index

    s = s_ref[0].astype(f32)      # (C, H*W), lane-dense
    t = t_ref[0].astype(f32)
    d = s - t

    # ---------------- init accumulators on the very first grid step ----------------
    @pl.when((p == 0) & (i == 0))
    def _():
        max_sc[...] = jnp.zeros_like(max_sc)
        berhu_sc[...] = jnp.zeros_like(berhu_sc)
        cos_sc[...] = jnp.zeros_like(cos_sc)
        gx_sc[...] = jnp.zeros_like(gx_sc)
        gy_sc[...] = jnp.zeros_like(gy_sc)

    # ------- pass 0: global max|d| (BerHu threshold) + cosine-sim + gradient partials -------
    @pl.when(p == 0)
    def _():
        if wb != 0.0:
            max_sc[...] = jnp.maximum(max_sc[...], jnp.max(jnp.abs(d)))
        if wc != 0.0:
            # channel-wise cosine similarity: sublane reduction over C
            st = jnp.sum(s * t, axis=0, keepdims=True)      # (1, H*W)
            ss = jnp.sum(s * s, axis=0, keepdims=True)
            tt = jnp.sum(t * t, axis=0, keepdims=True)
            eps = 1e-12                                     # F.normalize clamp
            denom = jnp.maximum(jnp.sqrt(ss), eps) * jnp.maximum(jnp.sqrt(tt), eps)
            cos_sc[...] += jnp.sum(st / denom)
        if wg != 0.0:
            # gradient along H: shift flattened H*W axis by W lanes (all positions valid)
            gx = d[:, w:] - d[:, :-w]                       # (C, (H-1)*W)
            gx_sc[...] += jnp.sum(gx * gx)
            # gradient along W: shift by 1 lane, mask out row boundaries
            gy = d[:, 1:] - d[:, :-1]                       # (C, H*W-1)
            col = lax.broadcasted_iota(jnp.int32, (c, hw - 1), 1)
            valid = (col % w) != (w - 1)
            gy_sc[...] += jnp.sum(jnp.where(valid, gy * gy, 0.0))

    # ------- pass 1 (only emitted when BerHu weight != 0): BerHu partial sum -------
    if wb != 0.0:
        @pl.when(p == 1)
        def _():
            diff = jnp.abs(d)
            cthr = 0.2 * max_sc[...]                        # (1,1); global max done in pass 0
            safe_c = jnp.maximum(cthr, 1e-30)               # guards degenerate s == t case
            excess = jnp.maximum(diff - cthr, 0.0)
            # BerHu(x) = x + relu(x - C)^2 / (2C)  ==  where(x < C, x, (x^2 + C^2) / (2C))
            berhu_sc[...] += jnp.sum(diff + excess * excess / (2.0 * safe_c))

    # ---------------- finalize on the very last grid step ----------------
    @pl.when((p == pl.num_programs(0) - 1) & (i == pl.num_programs(1) - 1))
    def _():
        berhu = berhu_sc[...] * (1.0 / float(n * c * h * w))
        cs = 1.0 - cos_sc[...] * (1.0 / float(n * h * w))
        grad = (gx_sc[...] * (1.0 / float(n * c * (h - 1) * w))
                + gy_sc[...] * (1.0 / float(n * c * h * (w - 1))))
        o_ref[...] = (wb * berhu + wc * cs + wg * grad).astype(o_ref.dtype)


def feature_distillation(student_feat, teacher_feat, config, *,
                         full_combination=True, grad_loss_only=False, cs_loss_only=False):
    """JAX/Pallas equivalent of FeatureDistillation.forward (NCHW inputs, any float dtype)."""
    n, c, h, w = student_feat.shape
    assert teacher_feat.shape == student_feat.shape
    hw = h * w

    if full_combination:
        wb = float(config['berhu_kd_scaling'])
        wc = float(config['cs_kd_scaling'])
        wg = float(config['grad_kd_scaling'])
    elif grad_loss_only:
        wb, wc, wg = 0.0, 0.0, float(config['grad_kd_scaling'])
    elif cs_loss_only:
        wb, wc, wg = 0.0, float(config['cs_kd_scaling']), 0.0
    else:
        raise ValueError("one of full_combination / grad_loss_only / cs_loss_only must be set")

    # Lane-dense views: pure collapsing reshape of contiguous NCHW (no transpose, no upcast).
    s = student_feat.reshape(n, c, hw)
    t = teacher_feat.reshape(n, c, hw)

    n_passes = 2 if wb != 0.0 else 1   # BerHu needs a global-max pass before accumulation

    kernel = functools.partial(_feature_distill_kernel,
                               n=n, c=c, h=h, w=w, wb=wb, wc=wc, wg=wg)

    out = pl.pallas_call(
        kernel,
        out_shape=jax.ShapeDtypeStruct((1, 1), jnp.float32),
        grid_spec=pltpu.PrefetchScalarGridSpec(
            num_scalar_prefetch=0,
            grid=(n_passes, n),
            in_specs=[pl.BlockSpec((1, c, hw), lambda p, i: (i, 0, 0)),
                      pl.BlockSpec((1, c, hw), lambda p, i: (i, 0, 0))],
            out_specs=pl.BlockSpec((1, 1), lambda p, i: (0, 0)),
            scratch_shapes=[pltpu.VMEM((1, 1), jnp.float32) for _ in range(5)]),
        compiler_params=pltpu.CompilerParams(
            dimension_semantics=("arbitrary", "arbitrary")),
    )(s, t)
    return out[0, 0]


# ---------------------------- pure-JAX references ----------------------------
def _ref_berhu(s, t):
    d = jnp.abs(s - t)
    cthr = 0.2 * jnp.max(d)
    return jnp.mean(jnp.where(d < cthr, d, (d * d + cthr * cthr) / (2.0 * cthr)))


def _ref_cs(s, t):
    sn = s / jnp.maximum(jnp.sqrt(jnp.sum(s * s, axis=1, keepdims=True)), 1e-12)
    tn = t / jnp.maximum(jnp.sqrt(jnp.sum(t * t, axis=1, keepdims=True)), 1e-12)
    return 1.0 - jnp.mean(jnp.sum(sn * tn, axis=1))


def _ref_grad(s, t):
    gx = (s[:, :, 1:, :] - s[:, :, :-1, :]) - (t[:, :, 1:, :] - t[:, :, :-1, :])
    gy = (s[:, :, :, 1:] - s[:, :, :, :-1]) - (t[:, :, :, 1:] - t[:, :, :, :-1])
    return jnp.mean(gx * gx) + jnp.mean(gy * gy)


if __name__ == "__main__":
    config = {'berhu_kd_scaling': 1.0, 'cs_kd_scaling': 0.5, 'grad_kd_scaling': 0.25}

    key = jax.random.PRNGKey(0)
    k1, k2 = jax.random.split(key)
    N, C, H, W = 2, 4, 16, 16
    student = jax.random.normal(k1, (N, C, H, W), dtype=jnp.float32)
    teacher = jax.random.normal(k2, (N, C, H, W), dtype=jnp.float32)

    berhu_ref = _ref_berhu(student, teacher)
    cs_ref = _ref_cs(student, teacher)
    grad_ref = _ref_grad(student, teacher)

    # full combination (two-pass grid)
    out = jax.block_until_ready(
        feature_distillation(student, teacher, config, full_combination=True))
    exp = (config['berhu_kd_scaling'] * berhu_ref
           + config['cs_kd_scaling'] * cs_ref
           + config['grad_kd_scaling'] * grad_ref)
    assert jnp.allclose(out, exp, rtol=1e-3, atol=1e-5), ("full", out, exp)

    # gradient-only path (single-pass grid, no BerHu pass emitted)
    out_g = jax.block_until_ready(feature_distillation(
        student, teacher, config, full_combination=False, grad_loss_only=True))
    exp_g = config['grad_kd_scaling'] * grad_ref
    assert jnp.allclose(out_g, exp_g, rtol=1e-3, atol=1e-5), ("grad", out_g, exp_g)

    # cosine-similarity-only path (single-pass grid)
    out_c = jax.block_until_ready(feature_distillation(
        student, teacher, config, full_combination=False, cs_loss_only=True))
    exp_c = config['cs_kd_scaling'] * cs_ref
    assert jnp.allclose(out_c, exp_c, rtol=1e-3, atol=1e-5), ("cs", out_c, exp_c)

    # bf16 inputs: no HBM upcast in the wrapper; the kernel upcasts per-tile in VMEM.
    sb = student.astype(jnp.bfloat16)
    tb = teacher.astype(jnp.bfloat16)
    sb32, tb32 = sb.astype(jnp.float32), tb.astype(jnp.float32)
    out_b = jax.block_until_ready(
        feature_distillation(sb, tb, config, full_combination=True))
    exp_b = (config['berhu_kd_scaling'] * _ref_berhu(sb32, tb32)
             + config['cs_kd_scaling'] * _ref_cs(sb32, tb32)
             + config['grad_kd_scaling'] * _ref_grad(sb32, tb32))
    assert jnp.allclose(out_b, exp_b, rtol=1e-2, atol=1e-4), ("bf16", out_b, exp_b)

    print("KERNEL_OK")
</pallas_src>

<mosaic_0001>
module attributes {stable_mosaic.version = 11 : i64} {
  func.func @_feature_distill_kernel(%arg0: i32, %arg1: i32, %arg2: memref<1x4x256xf32, #tpu.memory_space<vmem>>, %arg3: memref<1x4x256xf32, #tpu.memory_space<vmem>>, %arg4: memref<1x1xf32, #tpu.memory_space<vmem>>, %arg5: memref<1x1xf32, #tpu.memory_space<vmem>>, %arg6: memref<1x1xf32, #tpu.memory_space<vmem>>, %arg7: memref<1x1xf32, #tpu.memory_space<vmem>>, %arg8: memref<1x1xf32, #tpu.memory_space<vmem>>, %arg9: memref<1x1xf32, #tpu.memory_space<vmem>>) attributes {dimension_semantics = [#tpu.dimension_semantics<arbitrary>, #tpu.dimension_semantics<arbitrary>], iteration_bounds = array<i64: 2, 2>, scalar_prefetch = 0 : i64, scratch_operands = 5 : i64, tpu.core_type = #tpu.core_type<tc>, window_params = [{transform_indices = @transform_0, window_bounds = array<i64: 1, 4, 256>}, {transform_indices = @transform_1, window_bounds = array<i64: 1, 4, 256>}, {pipeline_mode = #tpu.pipeline_mode<synchronous>, transform_indices = @transform_2, window_bounds = array<i64: 1, 1>}]} {
    %c0 = arith.constant 0 : index
    %c0_0 = arith.constant 0 : index
    %c0_1 = arith.constant 0 : index
    %0 = vector.load %arg2[%c0, %c0_0, %c0_1] : memref<1x4x256xf32, #tpu.memory_space<vmem>>, vector<1x4x256xf32>
    %1 = vector.shape_cast %0 : vector<1x4x256xf32> to vector<4x256xf32>
    %c0_2 = arith.constant 0 : index
    %c0_3 = arith.constant 0 : index
    %c0_4 = arith.constant 0 : index
    %2 = vector.load %arg3[%c0_2, %c0_3, %c0_4] : memref<1x4x256xf32, #tpu.memory_space<vmem>>, vector<1x4x256xf32>
    %3 = vector.shape_cast %2 : vector<1x4x256xf32> to vector<4x256xf32>
    %4 = arith.subf %1, %3 : vector<4x256xf32>
    %c0_i32 = arith.constant 0 : i32
    %5 = arith.cmpi eq, %arg0, %c0_i32 : i32
    %c0_i32_5 = arith.constant 0 : i32
    %6 = arith.cmpi eq, %arg1, %c0_i32_5 : i32
    %7 = arith.andi %5, %6 : i1
    %8 = arith.extui %7 : i1 to i32
    %c0_i32_6 = arith.constant 0 : i32
    %9 = arith.cmpi ne, %8, %c0_i32_6 : i32
    scf.if %9 {
      %cst = arith.constant 0.000000e+00 : f32
      %21 = vector.broadcast %cst : f32 to vector<1x1xf32>
      %c0_13 = arith.constant 0 : index
      %c0_14 = arith.constant 0 : index
      %22 = vector.load %arg5[%c0_13, %c0_14] : memref<1x1xf32, #tpu.memory_space<vmem>>, vector<1x1xf32>
      tpu.vector_store %arg5[%c0_13, %c0_14], %21 {strides = array<i32>} : memref<1x1xf32, #tpu.memory_space<vmem>>, vector<1x1xf32>,
      %cst_15 = arith.constant 0.000000e+00 : f32
      %23 = vector.broadcast %cst_15 : f32 to vector<1x1xf32>
      %c0_16 = arith.constant 0 : index
      %c0_17 = arith.constant 0 : index
      %24 = vector.load %arg6[%c0_16, %c0_17] : memref<1x1xf32, #tpu.memory_space<vmem>>, vector<1x1xf32>
      tpu.vector_store %arg6[%c0_16, %c0_17], %23 {strides = array<i32>} : memref<1x1xf32, #tpu.memory_space<vmem>>, vector<1x1xf32>,
      %cst_18 = arith.constant 0.000000e+00 : f32
      %25 = vector.broadcast %cst_18 : f32 to vector<1x1xf32>
      %c0_19 = arith.constant 0 : index
      %c0_20 = arith.constant 0 : index
      %26 = vector.load %arg7[%c0_19, %c0_20] : memref<1x1xf32, #tpu.memory_space<vmem>>, vector<1x1xf32>
      tpu.vector_store %arg7[%c0_19, %c0_20], %25 {strides = array<i32>} : memref<1x1xf32, #tpu.memory_space<vmem>>, vector<1x1xf32>,
      %cst_21 = arith.constant 0.000000e+00 : f32
      %27 = vector.broadcast %cst_21 : f32 to vector<1x1xf32>
      %c0_22 = arith.constant 0 : index
      %c0_23 = arith.constant 0 : index
      %28 = vector.load %arg8[%c0_22, %c0_23] : memref<1x1xf32, #tpu.memory_space<vmem>>, vector<1x1xf32>
      tpu.vector_store %arg8[%c0_22, %c0_23], %27 {strides = array<i32>} : memref<1x1xf32, #tpu.memory_space<vmem>>, vector<1x1xf32>,
      %cst_24 = arith.constant 0.000000e+00 : f32
      %29 = vector.broadcast %cst_24 : f32 to vector<1x1xf32>
      %c0_25 = arith.constant 0 : index
      %c0_26 = arith.constant 0 : index
      %30 = vector.load %arg9[%c0_25, %c0_26] : memref<1x1xf32, #tpu.memory_space<vmem>>, vector<1x1xf32>
      tpu.vector_store %arg9[%c0_25, %c0_26], %29 {strides = array<i32>} : memref<1x1xf32, #tpu.memory_space<vmem>>, vector<1x1xf32>,
    } else {
    }
    %c0_i32_7 = arith.constant 0 : i32
    %10 = arith.cmpi eq, %arg0, %c0_i32_7 : i32
    %11 = arith.extui %10 : i1 to i32
    %c0_i32_8 = arith.constant 0 : i32
    %12 = arith.cmpi ne, %11, %c0_i32_8 : i32
    scf.if %12 {
      %c0_13 = arith.constant 0 : index
      %c0_14 = arith.constant 0 : index
      %21 = vector.load %arg5[%c0_13, %c0_14] : memref<1x1xf32, #tpu.memory_space<vmem>>, vector<1x1xf32>
      %22 = math.absf %4 : vector<4x256xf32>
      %23 = vector.shape_cast %22 : vector<4x256xf32> to vector<1x4x256xf32>
      %cst = arith.constant dense<0xFF800000> : vector<1xf32>
      %24 = vector.multi_reduction <maximumf>, %23, %cst [1, 2] : vector<1x4x256xf32> to vector<1xf32>
      %25 = vector.shape_cast %24 : vector<1xf32> to vector<1x1x1xf32>
      %26 = vector.extract %25[0, 0, 0] : f32 from vector<1x1x1xf32>
      %27 = vector.broadcast %26 : f32 to vector<1x1xf32>
      %28 = arith.maximumf %21, %27 : vector<1x1xf32>
      %c0_15 = arith.constant 0 : index
      %c0_16 = arith.constant 0 : index
      %29 = vector.load %arg5[%c0_15, %c0_16] : memref<1x1xf32, #tpu.memory_space<vmem>>, vector<1x1xf32>
      tpu.vector_store %arg5[%c0_15, %c0_16], %28 {strides = array<i32>} : memref<1x1xf32, #tpu.memory_space<vmem>>, vector<1x1xf32>,
      %30 = arith.mulf %1, %3 : vector<4x256xf32>
      %cst_17 = arith.constant dense<0.000000e+00> : vector<256xf32>
      %31 = vector.multi_reduction <add>, %30, %cst_17 [0] : vector<4x256xf32> to vector<256xf32>
      %32 = vector.shape_cast %31 : vector<256xf32> to vector<1x256xf32>
      %33 = arith.mulf %1, %1 : vector<4x256xf32>
      %cst_18 = arith.constant dense<0.000000e+00> : vector<256xf32>
      %34 = vector.multi_reduction <add>, %33, %cst_18 [0] : vector<4x256xf32> to vector<256xf32>
      %35 = vector.shape_cast %34 : vector<256xf32> to vector<1x256xf32>
      %36 = arith.mulf %3, %3 : vector<4x256xf32>
      %cst_19 = arith.constant dense<0.000000e+00> : vector<256xf32>
      %37 = vector.multi_reduction <add>, %36, %cst_19 [0] : vector<4x256xf32> to vector<256xf32>
      %38 = vector.shape_cast %37 : vector<256xf32> to vector<1x256xf32>
      %39 = math.sqrt %35 : vector<1x256xf32>
      %cst_20 = arith.constant 9.99999996E-13 : f32
      %40 = vector.broadcast %cst_20 : f32 to vector<1x256xf32>
      %41 = arith.maximumf %39, %40 : vector<1x256xf32>
      %42 = math.sqrt %38 : vector<1x256xf32>
      %cst_21 = arith.constant 9.99999996E-13 : f32
      %43 = vector.broadcast %cst_21 : f32 to vector<1x256xf32>
      %44 = arith.maximumf %42, %43 : vector<1x256xf32>
      %45 = arith.mulf %41, %44 : vector<1x256xf32>
      %c0_22 = arith.constant 0 : index
      %c0_23 = arith.constant 0 : index
      %46 = vector.load %arg7[%c0_22, %c0_23] : memref<1x1xf32, #tpu.memory_space<vmem>>, vector<1x1xf32>
      %47 = arith.divf %32, %45 : vector<1x256xf32>
      %48 = vector.shape_cast %47 : vector<1x256xf32> to vector<1x1x256xf32>
      %cst_24 = arith.constant dense<0.000000e+00> : vector<1xf32>
      %49 = vector.multi_reduction <add>, %48, %cst_24 [1, 2] : vector<1x1x256xf32> to vector<1xf32>
      %50 = vector.shape_cast %49 : vector<1xf32> to vector<1x1x1xf32>
      %51 = vector.extract %50[0, 0, 0] : f32 from vector<1x1x1xf32>
      %52 = vector.broadcast %51 : f32 to vector<1x1xf32>
      %53 = arith.addf %46, %52 : vector<1x1xf32>
      %c0_25 = arith.constant 0 : index
      %c0_26 = arith.constant 0 : index
      %54 = vector.load %arg7[%c0_25, %c0_26] : memref<1x1xf32, #tpu.memory_space<vmem>>, vector<1x1xf32>
      tpu.vector_store %arg7[%c0_25, %c0_26], %53 {strides = array<i32>} : memref<1x1xf32, #tpu.memory_space<vmem>>, vector<1x1xf32>,
      %55 = vector.extract_strided_slice %4 {offsets = [0, 16], sizes = [4, 240], strides = [1, 1]} : vector<4x256xf32> to vector<4x240xf32>
      %56 = vector.extract_strided_slice %4 {offsets = [0, 0], sizes = [4, 240], strides = [1, 1]} : vector<4x256xf32> to vector<4x240xf32>
      %57 = arith.subf %55, %56 : vector<4x240xf32>
      %c0_27 = arith.constant 0 : index
      %c0_28 = arith.constant 0 : index
      %58 = vector.load %arg8[%c0_27, %c0_28] : memref<1x1xf32, #tpu.memory_space<vmem>>, vector<1x1xf32>
      %59 = arith.mulf %57, %57 : vector<4x240xf32>
      %60 = vector.shape_cast %59 : vector<4x240xf32> to vector<1x4x240xf32>
      %cst_29 = arith.constant dense<0.000000e+00> : vector<1xf32>
      %61 = vector.multi_reduction <add>, %60, %cst_29 [1, 2] : vector<1x4x240xf32> to vector<1xf32>
      %62 = vector.shape_cast %61 : vector<1xf32> to vector<1x1x1xf32>
      %63 = vector.extract %62[0, 0, 0] : f32 from vector<1x1x1xf32>
      %64 = vector.broadcast %63 : f32 to vector<1x1xf32>
      %65 = arith.addf %58, %64 : vector<1x1xf32>
      %c0_30 = arith.constant 0 : index
      %c0_31 = arith.constant 0 : index
      %66 = vector.load %arg8[%c0_30, %c0_31] : memref<1x1xf32, #tpu.memory_space<vmem>>, vector<1x1xf32>
      tpu.vector_store %arg8[%c0_30, %c0_31], %65 {strides = array<i32>} : memref<1x1xf32, #tpu.memory_space<vmem>>, vector<1x1xf32>,
      %67 = vector.extract_strided_slice %4 {offsets = [0, 1], sizes = [4, 255], strides = [1, 1]} : vector<4x256xf32> to vector<4x255xf32>
      %68 = vector.extract_strided_slice %4 {offsets = [0, 0], sizes = [4, 255], strides = [1, 1]} : vector<4x256xf32> to vector<4x255xf32>
      %69 = arith.subf %67, %68 : vector<4x255xf32>
      %70 = tpu.iota {dimensions = array<i32: 1>} : vector<4x255xi32>
      %c16_i32 = arith.constant 16 : i32
      %c0_i32_32 = arith.constant 0 : i32
      %71 = arith.cmpi eq, %c16_i32, %c0_i32_32 : i32
      %c1_i32_33 = arith.constant 1 : i32
      %72 = arith.select %71, %c1_i32_33, %c16_i32 : i32
      %73 = vector.broadcast %72 : i32 to vector<4x255xi32>
      %74 = arith.remsi %70, %73 : vector<4x255xi32>
      %c0_i32_34 = arith.constant 0 : i32
      %75 = vector.broadcast %c0_i32_34 : i32 to vector<4x255xi32>
      %76 = arith.cmpi ne, %74, %75 : vector<4x255xi32>
      %c0_i32_35 = arith.constant 0 : i32
      %77 = vector.broadcast %c0_i32_35 : i32 to vector<4x255xi32>
      %78 = arith.cmpi slt, %74, %77 : vector<4x255xi32>
      %c0_i32_36 = arith.constant 0 : i32
      %79 = arith.cmpi slt, %72, %c0_i32_36 : i32
      %80 = vector.broadcast %79 : i1 to vector<4x255xi1>
      %81 = vector.broadcast %80 : vector<4x255xi1> to vector<4x255xi1>
      %82 = arith.xori %78, %81 : vector<4x255xi1>
      %83 = arith.andi %82, %76 : vector<4x255xi1>
      %84 = vector.broadcast %72 : i32 to vector<4x255xi32>
      %85 = arith.addi %74, %84 : vector<4x255xi32>
      %86 = arith.select %83, %85, %74 : vector<4x255xi1>, vector<4x255xi32>
      %c15_i32 = arith.constant 15 : i32
      %87 = vector.broadcast %c15_i32 : i32 to vector<4x255xi32>
      %88 = arith.cmpi ne, %86, %87 : vector<4x255xi32>
      %c0_37 = arith.constant 0 : index
      %c0_38 = arith.constant 0 : index
      %89 = vector.load %arg9[%c0_37, %c0_38] : memref<1x1xf32, #tpu.memory_space<vmem>>, vector<1x1xf32>
      %90 = arith.mulf %69, %69 : vector<4x255xf32>
      %cst_39 = arith.constant 0.000000e+00 : f32
      %91 = vector.broadcast %cst_39 : f32 to vector<4x255xf32>
      %92 = arith.select %88, %90, %91 : vector<4x255xi1>, vector<4x255xf32>
      %93 = vector.shape_cast %92 : vector<4x255xf32> to vector<1x4x255xf32>
      %cst_40 = arith.constant dense<0.000000e+00> : vector<1xf32>
      %94 = vector.multi_reduction <add>, %93, %cst_40 [1, 2] : vector<1x4x255xf32> to vector<1xf32>
      %95 = vector.shape_cast %94 : vector<1xf32> to vector<1x1x1xf32>
      %96 = vector.extract %95[0, 0, 0] : f32 from vector<1x1x1xf32>
      %97 = vector.broadcast %96 : f32 to vector<1x1xf32>
      %98 = arith.addf %89, %97 : vector<1x1xf32>
      %c0_41 = arith.constant 0 : index
      %c0_42 = arith.constant 0 : index
      %99 = vector.load %arg9[%c0_41, %c0_42] : memref<1x1xf32, #tpu.memory_space<vmem>>, vector<1x1xf32>
      tpu.vector_store %arg9[%c0_41, %c0_42], %98 {strides = array<i32>} : memref<1x1xf32, #tpu.memory_space<vmem>>, vector<1x1xf32>,
    } else {
    }
    %c1_i32 = arith.constant 1 : i32
    %13 = arith.cmpi eq, %arg0, %c1_i32 : i32
    %14 = arith.extui %13 : i1 to i32
    %c0_i32_9 = arith.constant 0 : i32
    %15 = arith.cmpi ne, %14, %c0_i32_9 : i32
    scf.if %15 {
      %21 = math.absf %4 : vector<4x256xf32>
      %c0_13 = arith.constant 0 : index
      %c0_14 = arith.constant 0 : index
      %22 = vector.load %arg5[%c0_13, %c0_14] : memref<1x1xf32, #tpu.memory_space<vmem>>, vector<1x1xf32>
      %cst = arith.constant 2.000000e-01 : f32
      %23 = vector.broadcast %cst : f32 to vector<1x1xf32>
      %24 = arith.mulf %23, %22 : vector<1x1xf32>
      %cst_15 = arith.constant 1.000000e-30 : f32
      %25 = vector.broadcast %cst_15 : f32 to vector<1x1xf32>
      %26 = arith.maximumf %24, %25 : vector<1x1xf32>
      %27 = vector.broadcast %24 : vector<1x1xf32> to vector<4x256xf32>
      %28 = arith.subf %21, %27 : vector<4x256xf32>
      %cst_16 = arith.constant 0.000000e+00 : f32
      %29 = vector.broadcast %cst_16 : f32 to vector<4x256xf32>
      %30 = arith.maximumf %28, %29 : vector<4x256xf32>
      %c0_17 = arith.constant 0 : index
      %c0_18 = arith.constant 0 : index
      %31 = vector.load %arg6[%c0_17, %c0_18] : memref<1x1xf32, #tpu.memory_space<vmem>>, vector<1x1xf32>
      %32 = arith.mulf %30, %30 : vector<4x256xf32>
      %cst_19 = arith.constant 2.000000e+00 : f32
      %33 = vector.broadcast %cst_19 : f32 to vector<1x1xf32>
      %34 = arith.mulf %33, %26 : vector<1x1xf32>
      %35 = vector.broadcast %34 : vector<1x1xf32> to vector<4x256xf32>
      %36 = arith.divf %32, %35 : vector<4x256xf32>
      %37 = arith.addf %21, %36 : vector<4x256xf32>
      %38 = vector.shape_cast %37 : vector<4x256xf32> to vector<1x4x256xf32>
      %cst_20 = arith.constant dense<0.000000e+00> : vector<1xf32>
      %39 = vector.multi_reduction <add>, %38, %cst_20 [1, 2] : vector<1x4x256xf32> to vector<1xf32>
      %40 = vector.shape_cast %39 : vector<1xf32> to vector<1x1x1xf32>
      %41 = vector.extract %40[0, 0, 0] : f32 from vector<1x1x1xf32>
      %42 = vector.broadcast %41 : f32 to vector<1x1xf32>
      %43 = arith.addf %31, %42 : vector<1x1xf32>
      %c0_21 = arith.constant 0 : index
      %c0_22 = arith.constant 0 : index
      %44 = vector.load %arg6[%c0_21, %c0_22] : memref<1x1xf32, #tpu.memory_space<vmem>>, vector<1x1xf32>
      tpu.vector_store %arg6[%c0_21, %c0_22], %43 {strides = array<i32>} : memref<1x1xf32, #tpu.memory_space<vmem>>, vector<1x1xf32>,
    } else {
    }
    %c1_i32_10 = arith.constant 1 : i32
    %16 = arith.cmpi eq, %arg0, %c1_i32_10 : i32
    %c1_i32_11 = arith.constant 1 : i32
    %17 = arith.cmpi eq, %arg1, %c1_i32_11 : i32
    %18 = arith.andi %16, %17 : i1
    %19 = arith.extui %18 : i1 to i32
    %c0_i32_12 = arith.constant 0 : i32
    %20 = arith.cmpi ne, %19, %c0_i32_12 : i32
    scf.if %20 {
      %c0_13 = arith.constant 0 : index
      %c0_14 = arith.constant 0 : index
      %21 = vector.load %arg6[%c0_13, %c0_14] : memref<1x1xf32, #tpu.memory_space<vmem>>, vector<1x1xf32>
      %cst = arith.constant 4.8828125E-4 : f32
      %22 = vector.broadcast %cst : f32 to vector<1x1xf32>
      %23 = arith.mulf %21, %22 : vector<1x1xf32>
      %c0_15 = arith.constant 0 : index
      %c0_16 = arith.constant 0 : index
      %24 = vector.load %arg7[%c0_15, %c0_16] : memref<1x1xf32, #tpu.memory_space<vmem>>, vector<1x1xf32>
      %cst_17 = arith.constant 0.001953125 : f32
      %25 = vector.broadcast %cst_17 : f32 to vector<1x1xf32>
      %26 = arith.mulf %24, %25 : vector<1x1xf32>
      %cst_18 = arith.constant 1.000000e+00 : f32
      %27 = vector.broadcast %cst_18 : f32 to vector<1x1xf32>
      %28 = arith.subf %27, %26 : vector<1x1xf32>
      %c0_19 = arith.constant 0 : index
      %c0_20 = arith.constant 0 : index
      %29 = vector.load %arg8[%c0_19, %c0_20] : memref<1x1xf32, #tpu.memory_space<vmem>>, vector<1x1xf32>
      %cst_21 = arith.constant 5.2083336E-4 : f32
      %30 = vector.broadcast %cst_21 : f32 to vector<1x1xf32>
      %31 = arith.mulf %29, %30 : vector<1x1xf32>
      %c0_22 = arith.constant 0 : index
      %c0_23 = arith.constant 0 : index
      %32 = vector.load %arg9[%c0_22, %c0_23] : memref<1x1xf32, #tpu.memory_space<vmem>>, vector<1x1xf32>
      %cst_24 = arith.constant 5.2083336E-4 : f32
      %33 = vector.broadcast %cst_24 : f32 to vector<1x1xf32>
      %34 = arith.mulf %32, %33 : vector<1x1xf32>
      %35 = arith.addf %31, %34 : vector<1x1xf32>
      %cst_25 = arith.constant 1.000000e+00 : f32
      %36 = vector.broadcast %cst_25 : f32 to vector<1x1xf32>
      %37 = arith.mulf %36, %23 : vector<1x1xf32>
      %cst_26 = arith.constant 5.000000e-01 : f32
      %38 = vector.broadcast %cst_26 : f32 to vector<1x1xf32>
      %39 = arith.mulf %38, %28 : vector<1x1xf32>
      %40 = arith.addf %37, %39 : vector<1x1xf32>
      %cst_27 = arith.constant 2.500000e-01 : f32
      %41 = vector.broadcast %cst_27 : f32 to vector<1x1xf32>
      %42 = arith.mulf %41, %35 : vector<1x1xf32>
      %43 = arith.addf %40, %42 : vector<1x1xf32>
      %c0_28 = arith.constant 0 : index
      %c0_29 = arith.constant 0 : index
      %44 = vector.load %arg4[%c0_28, %c0_29] : memref<1x1xf32, #tpu.memory_space<vmem>>, vector<1x1xf32>
      tpu.vector_store %arg4[%c0_28, %c0_29], %43 {strides = array<i32>} : memref<1x1xf32, #tpu.memory_space<vmem>>, vector<1x1xf32>,
    } else {
    }
    return
  }
  func.func @transform_0(%arg0: i32, %arg1: i32) -> (i32, i32, i32) {
    %c0_i32 = arith.constant 0 : i32
    %c0_i32_0 = arith.constant 0 : i32
    %c0_i32_1 = arith.constant 0 : i32
    return %arg1, %c0_i32, %c0_i32_0 : i32, i32, i32
  }
  func.func @transform_1(%arg0: i32, %arg1: i32) -> (i32, i32, i32) {
    %c0_i32 = arith.constant 0 : i32
    %c0_i32_0 = arith.constant 0 : i32
    %c0_i32_1 = arith.constant 0 : i32
    return %arg1, %c0_i32, %c0_i32_0 : i32, i32, i32
  }
  func.func @transform_2(%arg0: i32, %arg1: i32) -> (i32, i32) {
    %c0_i32 = arith.constant 0 : i32
    %c0_i32_0 = arith.constant 0 : i32
    %c0_i32_1 = arith.constant 0 : i32
    return %c0_i32, %c0_i32_0 : i32, i32
  }
}

</mosaic_0001>

<bundles_post_ra>
// kernel: tpu_custom_call.1
= control target key start
LH: loop header
LB: loop body
LE: loop exit
PB: predicated region body
PF: predicated region fallthrough
CT: control target
= control target key end

     0   :  { %7 = vsyncpa [#allocation8], 0  ;;  %s1197_s0 = inlined_call_operand.hbm [shape: f32[2,4,256], index: 0, kind: input, shape index: {}]   ;;  %s1198_s1 = inlined_call_operand.hbm [shape: f32[2,4,256], index: 1, kind: input, shape index: {}]   ;;  %s1199_s2 = inlined_call_operand.hbm [shape: f32[1,1], index: 2, kind: output, shape index: {}]  }
   0x1   :  { %9 = vsyncpa [#allocation8 + $0x1], 0 }
   0x2   :  { %10 = vsyncpa [#allocation11], 0 }
   0x3   :  { %12 = vsyncpa [#allocation11 + $0x1], 0 }
   0x4   :  { %13 = vsyncpa [#allocation9], 0  ;;  %s936_s9 = smov 0   ;;  %s938_s10 = smov 0  }
   0x5   :  { %s940_s11 = smov 0   ;;  %s942_s12 = smov 0  }
   0x6   :  { %s944_s13 = smov 0   ;;  %s946_s14 = smov 0  }
   0x7   :  { %s948_s15 = smov 0   ;;  %s950_s16 = smov 0  }
   0x8 LB: > { %s616_s17 = sadd.s32 4294967295, %s910_s16   ;;  %s28_s18 = sadd.s32 1, %s902_s14  ;;  %s910_s16 = sphi %s950_s16, %s19_s16   ;;  %s906_s15 = sphi %s948_s15, %s1216_s15   ;;  %s902_s14 = sphi %s946_s14, %s1215_s14   ;;  %s898_s13 = sphi %s944_s13, %s1214_s13   ;;  %s894_s12 = sphi %s942_s12, %s1213_s12   ;;  %s890_s11 = sphi %s940_s11, %s1212_s11   ;;  %s886_s10 = sphi %s938_s10, %s1211_s10   ;;  %s882_s9 = sphi %s936_s9, %s1210_s9  }
   0x9   : > { %p29_p0 = scmp.ge.s32.totalorder %s28_s18, 2  ;;  %s31_s19 = sadd.s32 1, %s906_s15 }
   0xa   : > { %s38_s20 = sadd.s32 1, %s890_s11  ;;  %p45_p1 = scmp.ne.s32.totalorder %s890_s11, %s886_s10 }
   0xb   : > { %s1218_s18 = smov (%p29_p0, %s28_s18), 0  ;;  %s1220_s19 = smov (!%p29_p0, %s31_s19), %s906_s15 }
   0xc   : > { %s35_s21 = ssub.s32 %s902_s14, %s1218_s18  ;;  %p46_p2 = scmp.eq.s32.totalorder %s910_s16, 0 }
   0xd   : > { %p33_p3 = scmp.ge.s32.totalorder %s1220_s19, 2  ;;  %p36_p4 = scmp.eq.s32.totalorder %s35_s21, 0 }
   0xe   : > { %p986_p5 = por %p46_p2, %p45_p1  ;;  %p51_p6 = scmp.ne.s32.totalorder %s886_s10, %s882_s9 }
   0xf   : > { %s1222_s19 = smov (%p33_p3, %s1220_s19), 0  ;;  %p52_p7 = scmp.eq.s32.totalorder %s616_s17, 0 }
  0x10   : > { %s994_s23 = scalar_select %p36_p4, %s890_s11, %s38_s20  }
  0x11   : > { %p661_p8 = scmp.lt.s32.totalorder %s910_s16, 4  ;;  %s1000_s24 = sand.u32 1, %s890_s11  }
  0x12   : > { %p1002_p9 = por %p52_p7, %p51_p6  ;;  %s619_s26 = sshll.u32 %s1000_s24, 3 }
  0x13   : > { %s634_s27 = sshll.u32 %s902_s14, 7  ;;  %s126_s3 = scalar_lea.vmem [#allocation7], %s619_s26 }
  0x14   : > { %s1202_s25 = scalar_select %p1002_p9, 1, 0 }
  0x15   : > { %s1013_s30 = scalar_lea.hbm %s1197_s0, %s634_s27  ;;  %s134_s4 = sshll.u32 %s126_s3, 4  ;;  %s1023_s4 = int_to_ptr.vmem [resolvable:$true] %s134_s4 }
  0x16   : > { %p1019_p10 = pnand %p661_p8, %p986_p5  ;;  %s123_s6 = scalar_lea.sflag [#allocation8], %s1000_s24 }
  0x17   : > { %s750_s7 = scalar_lea.hbm %s1013_s30, 128  ;;  %s755_s20 = scalar_lea.hbm %s1197_s0, 256 }
  0x18   : > { %p751_p13 = scmp.ne.s32.totalorder %s1013_s30, %s750_s7  ;;  %p752_p0 = pneg %p1019_p10 }
  0x19   : > { %p756_p3 = scmp.lt.u32.totalorder %s1013_s30, %s1197_s0  ;;  %p757_p4 = scmp.lt.u32.totalorder %s755_s20, %s750_s7 }
  0x1a   : > { %p753_p1 = pnand %p752_p0, %p751_p13  ;;  %p759_p6 = scmp.lt.u32.totalorder %s750_s7, %s1013_s30 }
  0x1b   : > { %p758_p5 = por %p757_p4, %p756_p3 }
  0x1c   : > { %p754_p2 = pneg %p753_p1 }
  0x1d   : > { %p760_p7 = por %p759_p6, %p758_p5 }
  0x1f   : > { %p761_p8 = pnand %p760_p7, %p754_p2 }
  0x21   : > { %764 = shalt.err (!%p761_p8)
}
  0x22   : > { %s765_s28 = scalar_lea.vmem %s1023_s4, 128  ;;  %s912_s29 = smov [#allocation7]  }
  0x23   : > { %p766_p13 = scmp.ne.s32.totalorder %s1023_s4, %s765_s28  ;;  %s770_s3 = sshll.u32 %s912_s29, 4  ;;  %s771_s3 = int_to_ptr.vmem [resolvable:$false] %s770_s3 }
  0x24   : > { %s772_s8 = scalar_lea.vmem %s771_s3, 256  ;;  %p773_p12 = scmp.lt.s32.totalorder %s1023_s4, %s771_s3 }
  0x25   : > { %p768_p1 = pnand %p766_p13, %p752_p0  ;;  %p774_p3 = scmp.lt.s32.totalorder %s772_s8, %s765_s28 }
  0x27   : > { %p769_p11 = pneg %p768_p1  ;;  %p775_p4 = por %p774_p3, %p773_p12 }
  0x29   : > { %p776_p5 = pnand %p775_p4, %p769_p11 }
  0x2b   : > { %779 = shalt.err (!%p776_p5)
}
  0x2c   : > { %657 = dma.hbm_to_vmem [thread:$0]  (!%p1019_p10), %s1013_s30, 128, %s1023_s4, %s123_s6  }
  0x2d   : > { %p1204_p2 = scmp.lt.s32.totalorder %s910_s16, 5  ;;  %p1205_p6 = scmp.ge.s32.totalorder %s910_s16, 1 }
  0x2e   : > { %s1066_s21 = scalar_lea.hbm %s1198_s1, %s634_s27  ;;  %s145_s22 = scalar_lea.vmem [#allocation10], %s619_s26 }
  0x2f   : > { %p1057_p7 = pnand %p1205_p6, %p1204_p2  ;;  %s153_s28 = sshll.u32 %s145_s22, 4  ;;  %s154_s28 = int_to_ptr.vmem [resolvable:$true] %s153_s28 }
  0x30   : > { %s142_s30 = scalar_lea.sflag [#allocation11], %s1000_s24  ;;  %s780_s4 = scalar_lea.hbm %s1066_s21, 128 }
  0x31   : > { %s1206_s7 = scalar_select %p1057_p7, 1, 0 }
  0x32   : > { %p781_p11 = scmp.ne.s32.totalorder %s1066_s21, %s780_s4  ;;  %s785_s27 = scalar_lea.hbm %s1198_s1, 256 }
  0x33   : > { %p786_p13 = scmp.lt.u32.totalorder %s1066_s21, %s1198_s1  ;;  %p787_p1 = scmp.lt.u32.totalorder %s785_s27, %s780_s4 }
  0x34   : > { %p783_p12 = pnand %p781_p11, %p752_p0  ;;  %p789_p4 = scmp.lt.u32.totalorder %s780_s4, %s1066_s21 }
  0x35   : > { %p788_p3 = por %p787_p1, %p786_p13 }
  0x36   : > { %p784_p8 = pneg %p783_p12 }
  0x37   : > { %p790_p5 = por %p789_p4, %p788_p3 }
  0x39   : > { %p791_p2 = pnand %p790_p5, %p784_p8 }
  0x3b   : > { %794 = shalt.err (!%p791_p2)
}
  0x3c   : > { %s795_s24 = scalar_lea.vmem %s154_s28, 128  ;;  %s913_s26 = smov [#allocation10]  }
  0x3d   : > { %p796_p6 = scmp.ne.s32.totalorder %s154_s28, %s795_s24  ;;  %s800_s9 = sshll.u32 %s913_s26, 4  ;;  %s801_s9 = int_to_ptr.vmem [resolvable:$false] %s800_s9 }
  0x3e   : > { %s802_s20 = scalar_lea.vmem %s801_s9, 256  ;;  %p803_p9 = scmp.lt.s32.totalorder %s154_s28, %s801_s9 }
  0x3f   : > { %p798_p11 = pnand %p796_p6, %p752_p0  ;;  %p804_p7 = scmp.lt.s32.totalorder %s802_s20, %s795_s24 }
  0x41   : > { %p799_p12 = pneg %p798_p11  ;;  %p805_p1 = por %p804_p7, %p803_p9 }
  0x43   : > { %p806_p13 = pnand %p805_p1, %p799_p12 }
  0x45   : > { %809 = shalt.err (!%p806_p13)
}
  0x46   : > { %660 = dma.hbm_to_vmem [thread:$0]  (!%p1019_p10), %s1066_s21, 128, %s154_s28, %s142_s30  }
  0x47   : > { %p1207_p8 = scmp.ne.s32.totalorder %s1206_s7, 0 }
  0x48   : > { %s164_s22 = sand.u32 (!%p1207_p8), 1, %s886_s10   ;;  %p1208_p0 = scmp.ne.s32.totalorder (!%p1207_p8), %s1202_s25, 0 }
  0x49   : > { %162 = sbr.rel (%p1207_p8) target bundleno = 963 (0x3c3), region = 28  ;;  %s626_s4 = sshll.u32 (!%p1207_p8), %s164_s22, 3 }
  0x4a   : > { %s165_s6 = scalar_lea.sflag (!%p1207_p8), [#allocation8], %s164_s22  ;;  %s168_s29 = scalar_lea.vmem (!%p1207_p8), [#allocation7], %s626_s4 }
  0x50   : > { %869 = dma.done.wait (%p1208_p0), %s165_s6, 128  }
  0x51   : > { %871 = vsyncadd (%p1208_p0), %s165_s6, 4294967168  ;;  %s174_s27 = scalar_lea.sflag [#allocation11], %s164_s22  ;;  %s177_s3 = scalar_lea.vmem [#allocation10], %s626_s4 }
  0x52   : > { %873 = dma.done.wait (%p1208_p0), %s174_s27, 128  }
  0x53   : > { %875 = vsyncadd (%p1208_p0), %s174_s27, 4294967168  ;;  %p201_p9 = scmp.eq.s32.totalorder %s898_s13, 0  ;;  %p202_p10 = scmp.eq.s32.totalorder %s894_s12, 0  ;;  %v1103_v0 = vld [vmem:[%s168_s29] sm:$0xff]  ;;  %v1105_v1 = vld [vmem:[%s177_s3] sm:$0xff] }
  0x54   : > { %v1109_v2 = vsub.f32 %v1103_v0, %v1105_v1 }
  0x55   : > { %p203_p7 = pnand %p202_p10, %p201_p9 }
  0x56   : > { %vm207_vm0 = vcmask (!%p203_p7), 0   ;;  %v914_v3 = vmov (!%p203_p7), 0.0  }
  0x57   : > { %206 = sbr.rel (%p203_p7) target bundleno = 94 (0x5e), region = 40  ;;  %208 = vst.msk [vmem:[#allocation2] sm:$0x1] (!%p203_p7), %vm207_vm0, %v914_v3  ;;  %209 = vst.msk [vmem:[#allocation3] sm:$0x1] (!%p203_p7), %vm207_vm0, %v914_v3 }
  0x58   : > { %210 = vst.msk [vmem:[#allocation4] sm:$0x1] (!%p203_p7), %vm207_vm0, %v914_v3  ;;  %211 = vst.msk [vmem:[#allocation5] sm:$0x1] (!%p203_p7), %vm207_vm0, %v914_v3 }
  0x59   : > { %212 = vst.msk [vmem:[#allocation6] sm:$0x1] (!%p203_p7), %vm207_vm0, %v914_v3 }
  0x5e PF: > { %p628_p3 = scmp.ne.s32.totalorder %s898_s13, 0 }
  0x5f   : > { %s915_s25 = smov (!%p628_p3), 1   ;;  %s916_s5 = smov (!%p628_p3), 16   ;;  %v256_v4 = vmul.f32 (!%p628_p3), %v1103_v0, %v1103_v0  ;;  %v274_v5 = vmul.f32 (!%p628_p3), %v1105_v1, %v1105_v1  ;;  %vm221_vm1 = vcmask (!%p628_p3), 1043456   ;;  %vm386_vm2 = vcmask (!%p628_p3), 7168  }
  0x60   : > { %215 = sbr.rel (%p628_p3) target bundleno = 557 (0x22d), region = 44  ;;  %383 = vrot.lane.b32.xlu0 (!%p628_p3), %v1109_v2, %s915_s25  ;;  %vm351_vm3 = vcmask (!%p628_p3), 130048   ;;  %v238_v44 = vmul.f32 (!%p628_p3), %v1105_v1, %v1103_v0  ;;  %s917_s7 = smov (!%p628_p3), 127   ;;  %vm331_vm12 = vcmask (!%p628_p3), 1040384   ;;  %vm427_vm13 = vcmask (!%p628_p3), 1039360  }
  0x61   : > { %v258_v6 = vcombine.high (!%p628_p3), %v256_v4, %v256_v4  ;;  %v276_v7 = vcombine.high (!%p628_p3), %v274_v5, %v274_v5  ;;  %v260_v8 = vsel (!%p628_p3), %vm221_vm1, %v256_v4, 0.0  ;;  %v278_v10 = vsel (!%p628_p3), %vm221_vm1, %v274_v5, 0.0  ;;  %s918_s21 = smov (!%p628_p3), 112  }
  0x62   : > { %v261_v11 = vrot.slane (!%p628_p3), %v260_v8, 4  ;;  %v279_v14 = vrot.slane (!%p628_p3), %v278_v10, 4  ;;  %v240_v52 = vcombine.high (!%p628_p3), %v238_v44, %v238_v44  ;;  %v242_v62 = vsel (!%p628_p3), %vm221_vm1, %v238_v44, 0.0 }
  0x63   : > { %v267_v9 = vsel (!%p628_p3), %vm221_vm1, %v258_v6, 0.0  ;;  %v285_v12 = vsel (!%p628_p3), %vm221_vm1, %v276_v7, 0.0  ;;  %v243_v7 = vrot.slane (!%p628_p3), %v242_v62, 4  ;;  %vm363_vm0 = vcmask (!%p628_p3), 916480  }
  0x64   : > { %348 = vrot.lane.b32.xlu0 (!%p628_p3), %v1109_v2, %s916_s5  ;;  %v268_v13 = vrot.slane (!%p628_p3), %v267_v9, 4  ;;  %v286_v15 = vrot.slane (!%p628_p3), %v285_v12, 4  ;;  %v262_v16 = vadd.f32 (!%p628_p3), %v261_v11, %v260_v8  ;;  %v280_v18 = vadd.f32 (!%p628_p3), %v279_v14, %v278_v10 }
  0x65   : > { %v249_v3 = vsel (!%p628_p3), %vm221_vm1, %v240_v52, 0.0 }
  0x66   : > { %v269_v17 = vadd.f32 (!%p628_p3), %v268_v13, %v267_v9  ;;  %v287_v19 = vadd.f32 (!%p628_p3), %v286_v15, %v285_v12  ;;  %v263_v20 = vrot.slane (!%p628_p3), %v262_v16, 2  ;;  %v281_v22 = vrot.slane (!%p628_p3), %v280_v18, 2 }
  0x67   : > { %v250_v8 = vrot.slane %v249_v3, 4  ;;  %v244_v15 = vadd.f32 %v243_v7, %v242_v62 }
  0x68   : > { %v270_v21 = vrot.slane %v269_v17, 2  ;;  %v288_v23 = vrot.slane %v287_v19, 2  ;;  %v264_v24 = vadd.f32 %v263_v20, %v262_v16  ;;  %v282_v26 = vadd.f32 %v281_v22, %v280_v18 }
  0x69   : > { %v251_v16 = vadd.f32 %v250_v8, %v249_v3 }
  0x6a   : > { %v271_v25 = vadd.f32 %v270_v21, %v269_v17  ;;  %v289_v27 = vadd.f32 %v288_v23, %v287_v19  ;;  %v265_v28 = vrot.slane %v264_v24, 1  ;;  %v283_v30 = vrot.slane %v282_v26, 1 }
  0x6b   : > { %v245_v19 = vrot.slane %v244_v15, 2  ;;  %v252_v20 = vrot.slane %v251_v16, 2  ;;  %v217_v21 = vand.u32 2147483647, %v1109_v2 }
  0x6c   : > { %v272_v29 = vrot.slane %v271_v25, 1  ;;  %v290_v31 = vrot.slane %v289_v27, 1  ;;  %v266_v32 = vadd.f32 %v265_v28, %v264_v24  ;;  %v284_v34 = vadd.f32 %v283_v30, %v282_v26 }
  0x6d   : > { %v246_v22 = vadd.f32 %v245_v19, %v244_v15  ;;  %v253_v23 = vadd.f32 %v252_v20, %v251_v16  ;;  %v219_v24 = vcombine.high %v217_v21, %v217_v21 }
  0x6e   : > { %v273_v33 = vadd.f32 %v272_v29, %v271_v25  ;;  %v291_v35 = vadd.f32 %v290_v31, %v289_v27  ;;  %735 = vrsqrt.f32 %v266_v32  ;;  %vm294_vm4 = vcmp.eq.f32.partialorder %v266_v32, inf }
  0x6f   : > { %vm310_vm6 = vcmp.eq.f32.partialorder %v284_v34, inf  ;;  %vm296_vm7 = vcmp.eq.f32.partialorder %v266_v32, 0.0  ;;  %v297_v58 = vand.u32 2147483648, %v266_v32  ;;  %v313_v61 = vand.u32 2147483648, %v284_v34 }
  0x70   : > { %737 = vrsqrt.f32 %v273_v33  ;;  %vm301_vm5 = vcmp.eq.f32.partialorder %v273_v33, inf  ;;  %vm317_vm8 = vcmp.eq.f32.partialorder %v291_v35, inf  ;;  %vm303_vm9 = vcmp.eq.f32.partialorder %v273_v33, 0.0 }
  0x71   : > { %739 = vrsqrt.f32 %v284_v34  ;;  %v304_v60 = vand.u32 2147483648, %v273_v33  ;;  %vm312_vm10 = vcmp.eq.f32.partialorder %v284_v34, 0.0  ;;  %v320_v0 = vand.u32 2147483648, %v291_v35 }
  0x72   : > { %741 = vrsqrt.f32 %v291_v35  ;;  %vm319_vm11 = vcmp.eq.f32.partialorder %v291_v35, 0.0  ;;  %v247_v25 = vrot.slane %v246_v22, 1  ;;  %v254_v26 = vrot.slane %v253_v23, 1 }
  0x73   : > { %v222_v27 = vsel %vm221_vm1, %v217_v21, -inf  ;;  %v223_v28 = vsel %vm221_vm1, %v219_v24, -inf }
  0x74   : > { %v248_v30 = vadd.f32 %v247_v25, %v246_v22  ;;  %v255_v31 = vadd.f32 %v254_v26, %v253_v23 }
  0x78   : > { %v736_v39 = vpop.eup %735 }
  0x79   : > { %v293_v49 = vmul.f32 %v736_v39, %v266_v32  ;;  %v390_v39 = vlaneseq }
  0x7a   : > { %v738_v42 = vpop.eup %737 }
  0x7b   : > { %v740_v45 = vpop.eup %739  ;;  %v300_v51 = vmul.f32 %v738_v42, %v273_v33  ;;  %v295_v57 = vsel %vm294_vm4, %v266_v32, %v293_v49 }
  0x7c   : > { %v742_v47 = vpop.eup %741  ;;  %v309_v53 = vmul.f32 %v740_v45, %v284_v34  ;;  %v298_v5 = vsel %vm296_vm7, %v297_v58, %v295_v57 }
  0x7d   : > { %v316_v56 = vmul.f32 %v742_v47, %v291_v35  ;;  %v302_v59 = vsel %vm301_vm5, %v273_v33, %v300_v51  ;;  %v306_v11 = vmax.f32 %v298_v5, 1e-12  ;;  %v224_v33 = vmax.f32 %v222_v27, %v223_v28 }
  0x7e   : > { %v311_v63 = vsel %vm310_vm6, %v284_v34, %v309_v53  ;;  %v305_v9 = vsel %vm303_vm9, %v304_v60, %v302_v59 }
  0x7f   : > { %v318_v4 = vsel %vm317_vm8, %v291_v35, %v316_v56  ;;  %v314_v6 = vsel %vm312_vm10, %v313_v61, %v311_v63  ;;  %v307_v13 = vmax.f32 %v305_v9, 1e-12  ;;  %v216_v9 = vld [vmem:[#allocation2] sm:$0x1] }
  0x80   : > { %v321_v10 = vsel %vm319_vm11, %v320_v0, %v318_v4  ;;  %v322_v12 = vmax.f32 %v314_v6, 1e-12 }
  0x81   : > { %v323_v14 = vmax.f32 %v321_v10, 1e-12 }
  0x82   : > { %v324_v17 = vmul.f32 %v322_v12, %v306_v11  ;;  %v326_v12 = vld [vmem:[#allocation4] sm:$0x1] }
  0x83   : > { %v325_v18 = vmul.f32 %v323_v14, %v307_v13 }
  0x84   : > { %743 = vrcp.f32 %v324_v17 }
  0x85   : > { %745 = vrcp.f32 %v325_v18 }
  0x8e   : > { %v744_v29 = vpop.eup %743 }
  0x8f   : > { %v746_v32 = vpop.eup %745  ;;  %v328_v34 = vmul.f32 %v744_v29, %v248_v30  ;;  %v355_v29 = vld [vmem:[#allocation5] sm:$0x1] }
  0x90   : > { %v330_v35 = vmul.f32 %v746_v32, %v255_v31  ;;  %v419_v32 = vld [vmem:[#allocation6] sm:$0x1] }
  0xd2   : > { %v384_v36 = vpop.permute.xlu0 %383 }
  0xd3   : > { %v385_v37 = vrot.slane %v384_v36, 4 }
  0xd5   : > { %v387_v38 = vsel %vm386_vm2, %v385_v37, %v384_v36  ;;  %v332_v36 = vsel %vm331_vm12, %v328_v34, 0.0  ;;  %v333_v37 = vsel %vm331_vm12, %v330_v35, 0.0  ;;  %vm368_vm2 = vcmask 912384  }
  0xd6   : > { %v349_v40 = vpop.permute.xlu0 %348  ;;  %v389_v41 = vsub.f32 %v1109_v2, %v387_v38  ;;  %v334_v38 = vadd.f32 %v333_v37, %v332_v36 }
  0xd7   : > { %v350_v43 = vrot.slane %v349_v40, 4 }
  0xd8   : > { %v420_v46 = vmul.f32 %v389_v41, %v389_v41 }
  0xd9   : > { %v352_v48 = vsel %vm351_vm3, %v350_v43, %v349_v40  ;;  %v391_v40 = vand.u32 127, %v390_v39  ;;  %vm434_vm3 = vcmask 1035264  }
  0xda   : > { %v354_v50 = vsub.f32 %v1109_v2, %v352_v48  ;;  %423 = vrot.lane.b32.xlu1 %v420_v46, %s917_s7  ;;  %v422_v55 = vcombine.high %v420_v46, %v420_v46 }
  0xdb   : > { %v392_v41 = vadd.s32 128, %v391_v40  ;;  %v397_v43 = vand.u32 15, %v391_v40 }
  0xdc   : > { %v356_v54 = vmul.f32 %v354_v50, %v354_v50 }
  0xdd   : > { %v404_v44 = vand.u32 15, %v392_v41  ;;  %vm417_vm14 = vcmp.ne.s32.totalorder %v397_v43, 15 }
  0xde   : > { %425 = vrot.lane.b32.xlu1 %v422_v55, %s917_s7  ;;  %359 = vrot.lane.b32.xlu0 %v356_v54, %s918_s21  ;;  %v358_v1 = vcombine.high %v356_v54, %v356_v54 }
  0xdf   : > { %vm418_vm15 = vcmp.ne.s32.totalorder %v404_v44, 15 }
  0xe2   : > { %361 = vrot.lane.b32.xlu1 %v358_v1, %s918_s21 }
  0xfd   : > { %225 = vmax.xlane.f32.xlu0 %v224_v33 }
 0x106   : > { %335 = vadd.xlane.f32.xlu1 %v334_v38 }
 0x14c   : > { %v424_v42 = vpop.permute.xlu1 %423 }
 0x150   : > { %v426_v45 = vpop.permute.xlu1 %425  ;;  %v360_v47 = vpop.permute.xlu0 %359 }
 0x151   : > { %v428_v46 = vsel %vm427_vm13, %v424_v42, %v426_v45  ;;  %v432_v50 = vsel %vm418_vm15, %v426_v45, 0.0 }
 0x152   : > { %v431_v49 = vsel %vm417_vm14, %v428_v46, 0.0  ;;  %v435_v56 = vsel %vm434_vm3, %v432_v50, 0.0 }
 0x153   : > { %v433_v55 = vsel %vm221_vm1, %v431_v49, 0.0 }
 0x154   : > { %v362_v48 = vpop.permute.xlu1 %361  ;;  %v436_v57 = vadd.f32 %v435_v56, %v433_v55 }
 0x155   : > { %v364_v51 = vsel %vm363_vm0, %v360_v47, %v362_v48  ;;  %v369_v52 = vsel %vm368_vm2, %v362_v48, 0.0 }
 0x156   : > { %v367_v53 = vsel %vm221_vm1, %v364_v51, 0.0  ;;  %vm236_vm1 = vcmask 0  }
 0x157   : > { %v370_v54 = vadd.f32 %v369_v52, %v367_v53 }
 0x159   : > { %371 = vadd.xlane.f32.xlu0 %v370_v54 }
 0x15d   : > { %437 = vadd.xlane.f32.xlu0 %v436_v57 }
 0x18a   : > { %v226_v58 = vpop.xlane.xlu0 %225 }
 0x18b   : > { %v227_v59 = vrot.slane %v226_v58, 4 }
 0x18d   : > { %v228_v60 = vmax.f32 %v226_v58, %v227_v59 }
 0x18f   : > { %v229_v61 = vrot.slane %v228_v60, 2 }
 0x191   : > { %v230_v62 = vmax.f32 %v228_v60, %v229_v61 }
 0x193   : > { %v336_v63 = vpop.xlane.xlu1 %335  ;;  %v231_v0 = vrot.slane %v230_v62, 1 }
 0x194   : > { %v337_v1 = vrot.slane %v336_v63, 4 }
 0x195   : > { %v232_v3 = vmax.f32 %v230_v62, %v231_v0 }
 0x196   : > { %v338_v4 = vadd.f32 %v337_v1, %v336_v63 }
 0x197   : > { %636 = vpush %v232_v3 }
 0x198   : > { %v339_v5 = vrot.slane %v338_v4, 2 }
 0x19a   : > { %v340_v6 = vadd.f32 %v339_v5, %v338_v4 }
 0x19c   : > { %v341_v7 = vrot.slane %v340_v6, 1 }
 0x19e   : > { %v342_v8 = vadd.f32 %v341_v7, %v340_v6 }
 0x1a0   : > { %638 = vpush %v342_v8 }
 0x1c8   : > { %s637_s28 = spop %636 }
 0x1c9   : > { %v234_v10 = vstv %s637_s28 }
 0x1ca   : > { %v235_v11 = vmax.f32 %v216_v9, %v234_v10 }
 0x1cc   : > { %237 = vst.msk [vmem:[#allocation2] sm:$0x1] %vm236_vm1, %v235_v11 }
 0x1d1   : > { %s639_s30 = spop %638 }
 0x1d2   : > { %v344_v13 = vstv %s639_s30 }
 0x1d3   : > { %v345_v14 = vadd.f32 %v344_v13, %v326_v12 }
 0x1d5   : > { %346 = vst.msk [vmem:[#allocation4] sm:$0x1] %vm236_vm1, %v345_v14 }
 0x1e6   : > { %v372_v15 = vpop.xlane.xlu0 %371 }
 0x1e7   : > { %v373_v16 = vrot.slane %v372_v15, 4 }
 0x1e9   : > { %v374_v17 = vadd.f32 %v373_v16, %v372_v15 }
 0x1ea   : > { %v438_v18 = vpop.xlane.xlu0 %437 }
 0x1eb   : > { %v375_v19 = vrot.slane %v374_v17, 2  ;;  %v439_v20 = vrot.slane %v438_v18, 4 }
 0x1ed   : > { %v440_v21 = vadd.f32 %v439_v20, %v438_v18  ;;  %v376_v22 = vadd.f32 %v375_v19, %v374_v17 }
 0x1ef   : > { %v441_v23 = vrot.slane %v440_v21, 2  ;;  %v377_v24 = vrot.slane %v376_v22, 1 }
 0x1f1   : > { %v442_v25 = vadd.f32 %v441_v23, %v440_v21  ;;  %v378_v26 = vadd.f32 %v377_v24, %v376_v22 }
 0x1f3   : > { %640 = vpush %v378_v26  ;;  %v443_v27 = vrot.slane %v442_v25, 1 }
 0x1f5   : > { %v444_v28 = vadd.f32 %v443_v27, %v442_v25 }
 0x1f7   : > { %642 = vpush %v444_v28 }
 0x224   : > { %s641_s8 = spop %640 }
 0x225   : > { %v380_v30 = vstv %s641_s8 }
 0x226   : > { %v381_v31 = vadd.f32 %v380_v30, %v355_v29 }
 0x228   : > { %382 = vst.msk [vmem:[#allocation5] sm:$0x1] %vm236_vm1, %v381_v31  ;;  %s643_s24 = spop %642 }
 0x229   : > { %v446_v33 = vstv %s643_s24 }
 0x22a   : > { %v447_v34 = vadd.f32 %v446_v33, %v419_v32 }
 0x22c   : > { %448 = vst.msk [vmem:[#allocation6] sm:$0x1] %vm236_vm1, %v447_v34 }
 0x22d PF: > { %p449_p4 = scmp.eq.s32.totalorder %s898_s13, 1  ;;  %p629_p5 = scmp.ne.s32.totalorder %s898_s13, 1 }
 0x22e   : > { %v454_v35 = vld [vmem:[#allocation2] sm:$0x1] (!%p629_p5)  ;;  %v458_v36 = vlaneseq (!%p629_p5)  ;;  %v919_v37 = vmov (!%p629_p5), 0   ;;  %v453_v46 = vand.u32 (!%p629_p5), 2147483647, %v1109_v2  ;;  %vm486_vm4 = vcmask (!%p629_p5), 1043456  }
 0x22f   : > { %452 = sbr.rel (%p629_p5) target bundleno = 923 (0x39b), region = 48  ;;  %747 = vset.pattern.permute.xlu0 (!%p629_p5), %v919_v37  ;;  %v455_v38 = vmul.f32 (!%p629_p5), 0.2, %v454_v35  ;;  %v468_v0 = vld [vmem:[#allocation3] sm:$0x1] (!%p629_p5)  ;;  %vm501_vm5 = vcmask (!%p629_p5), 0  }
 0x230   : > { %v459_v39 = vshrl.u32 (!%p629_p5), %v458_v36, 7 }
 0x231   : > { %v456_v40 = vmax.f32 (!%p629_p5), %v455_v38, 1e-30 }
 0x232   : > { %v460_v41 = vsub.s32 (!%p629_p5), 0, %v459_v39 }
 0x233   : > { %v470_v42 = vmul.f32 (!%p629_p5), 2.0, %v456_v40 }
 0x234   : > { %v461_v44 = vrot.slane (!%p629_p5), %v455_v38, %v460_v41 }
 0x235   : > { %v475_v43 = vrot.slane (!%p629_p5), %v470_v42, %v460_v41 }
 0x237   : > { %477 = vperm.xlu0 %747, %v475_v43  }
 0x23b   : > { %463 = vperm.xlu0 %747, %v461_v44  }
 0x2b6   : > { %v478_v45 = vpop.permute.xlu0 %477 }
 0x2b7   : > { %748 = vrcp.f32 %v478_v45 }
 0x2ba   : > { %v464_v47 = vpop.permute.xlu0 %463 }
 0x2bb   : > { %v466_v48 = vsub.f32 %v453_v46, %v464_v47 }
 0x2bd   : > { %v467_v49 = vmax.f32 %v466_v48, 0.0 }
 0x2bf   : > { %v469_v50 = vmul.f32 %v467_v49, %v467_v49 }
 0x2c1   : > { %v749_v51 = vpop.eup %748 }
 0x2c2   : > { %v481_v52 = vmul.f32 %v749_v51, %v469_v50 }
 0x2c4   : > { %v482_v53 = vadd.f32 %v481_v52, %v453_v46 }
 0x2c6   : > { %v484_v54 = vcombine.high %v482_v53, %v482_v53  ;;  %v487_v55 = vsel %vm486_vm4, %v482_v53, 0.0 }
 0x2c8   : > { %v488_v56 = vsel %vm486_vm4, %v484_v54, 0.0 }
 0x2c9   : > { %v489_v57 = vadd.f32 %v488_v56, %v487_v55 }
 0x2cb   : > { %490 = vadd.xlane.f32.xlu1 %v489_v57 }
 0x358   : > { %v491_v58 = vpop.xlane.xlu1 %490 }
 0x359   : > { %v492_v59 = vrot.slane %v491_v58, 4 }
 0x35b   : > { %v493_v60 = vadd.f32 %v492_v59, %v491_v58 }
 0x35d   : > { %v494_v61 = vrot.slane %v493_v60, 2 }
 0x35f   : > { %v495_v62 = vadd.f32 %v494_v61, %v493_v60 }
 0x361   : > { %v496_v63 = vrot.slane %v495_v62, 1 }
 0x363   : > { %v497_v2 = vadd.f32 %v496_v63, %v495_v62 }
 0x365   : > { %644 = vpush %v497_v2 }
 0x396   : > { %s645_s26 = spop %644 }
 0x397   : > { %v499_v1 = vstv %s645_s26 }
 0x398   : > { %v500_v3 = vadd.f32 %v499_v1, %v468_v0 }
 0x39a   : > { %502 = vst.msk [vmem:[#allocation3] sm:$0x1] %vm501_vm5, %v500_v3 }
 0x39b PF: > { %p503_p2 = scmp.eq.s32.totalorder %s894_s12, 1 }
 0x39d   : > { %p504_p6 = pnand %p503_p2, %p449_p4 }
 0x39e   : > { %v510_v5 = vld [vmem:[#allocation4] sm:$0x1] (!%p504_p6)  ;;  %v513_v6 = vld [vmem:[#allocation5] sm:$0x1] (!%p504_p6)  ;;  %v515_v9 = vld [vmem:[#allocation6] sm:$0x1] (!%p504_p6) }
 0x39f   : > { %507 = sbr.rel (%p504_p6) target bundleno = 938 (0x3aa), region = 52  ;;  %v511_v7 = vmul.f32 (!%p504_p6), 0.001953125, %v510_v5  ;;  %v514_v8 = vmul.f32 (!%p504_p6), 0.00052083336, %v513_v6  ;;  %v516_v10 = vmul.f32 (!%p504_p6), 0.00052083336, %v515_v9 }
 0x3a0   : > { %vm522_vm6 = vcmask (!%p504_p6), 0  }
 0x3a1   : > { %v508_v4 = vld [vmem:[#allocation3] sm:$0x1] (!%p504_p6)  ;;  %v512_v12 = vsub.f32 (!%p504_p6), 1.0, %v511_v7  ;;  %v517_v13 = vadd.f32 (!%p504_p6), %v516_v10, %v514_v8 }
 0x3a2   : > { %v509_v11 = vmul.f32 (!%p504_p6), 0.00048828125, %v508_v4 }
 0x3a3   : > { %v518_v14 = vmul.f32 (!%p504_p6), 0.5, %v512_v12  ;;  %v520_v15 = vmul.f32 (!%p504_p6), 0.25, %v517_v13 }
 0x3a5   : > { %v519_v16 = vadd.f32 (!%p504_p6), %v518_v14, %v509_v11 }
 0x3a7   : > { %v521_v17 = vadd.f32 %v520_v15, %v519_v16 }
 0x3a9   : > { %523 = vst.msk [vmem:[#allocation12] sm:$0x1] %vm522_vm6, %v521_v17 }
 0x3aa PF: > { %p1147_p11 = scmp.eq.s32.totalorder %s616_s17, 3  ;;  %s920_s13 = smov [#allocation12]  }
 0x3ab   : > { %s531_s9 = sshll.u32 %s920_s13, 4  ;;  %s532_s9 = int_to_ptr.vmem [resolvable:$true] %s531_s9 }
 0x3ac   : > { %s810_s20 = scalar_lea.vmem %s532_s9, 16  ;;  %s816_s22 = scalar_lea.vmem %s532_s9, 32 }
 0x3ad   : > { %p811_p12 = scmp.ne.s32.totalorder %s532_s9, %s810_s20  ;;  %p817_p8 = scmp.lt.s32.totalorder %s532_s9, %s532_s9 }
 0x3ae   : > { %p818_p0 = scmp.lt.s32.totalorder %s816_s22, %s810_s20 }
 0x3af   : > { %p812_p1 = pnand %p811_p12, %p1147_p11 }
 0x3b0   : > { %p819_p9 = por %p818_p0, %p817_p8 }
 0x3b1   : > { %p813_p13 = pneg %p812_p1 }
 0x3b3   : > { %p820_p10 = pnand %p819_p9, %p813_p13 }
 0x3b5   : > { %823 = shalt.err (!%p820_p10)
}
 0x3b6   : > { %s824_s6 = scalar_lea.hbm %s1199_s2, 16 }
 0x3b7   : > { %p825_p7 = scmp.ne.s32.totalorder %s1199_s2, %s824_s6  ;;  %p830_p5 = scmp.lt.u32.totalorder %s824_s6, %s1199_s2 }
 0x3b9   : > { %p826_p3 = pnand %p825_p7, %p1147_p11 }
 0x3bb   : > { %p827_p4 = pneg %p826_p3 }
 0x3bd   : > { %p832_p2 = pnand %p830_p5, %p827_p4 }
 0x3bf   : > { %835 = shalt.err (!%p832_p2)
}
 0x3c0   : > { %651 = dma.vmem_to_hbm [thread:$0]  (%p1147_p11), %s532_s9, 16, %s1199_s2, [#allocation9]  }
 0x3c1   : > { %877 = dma.done.wait (%p1147_p11), [#allocation9], 16  }
 0x3c2   : > { %879 = vsyncadd (%p1147_p11), [#allocation9], 4294967280 }
 0x3c3 PF: > { %s19_s16 = sadd.s32 1, %s910_s16   ;;  %s1210_s9 = smov %s886_s10 }
 0x3c4   : > { %p16_p6 = scmp.ge.s32.totalorder %s19_s16, 6   ;;  %s1211_s10 = smov %s890_s11 }
 0x3c5   : > { %s1212_s11 = smov %s994_s23  ;;  %s1213_s12 = smov %s902_s14 }
 0x3c6   : > { %s1214_s13 = smov %s906_s15  ;;  %s1215_s14 = smov %s1218_s18 }
 0x3c7   : > { %s1216_s15 = smov %s1222_s19  ;;  %18 = sbr.rel (!%p16_p6) target bundleno = 8 (0x8), region = 94 }
 0x3ce   :  { %544 = vsyncpa [#allocation8], 1 }
 0x3cf   :  { %546 = vsyncpa [#allocation8 + $0x1], 1 }
 0x3d0   :  { %547 = vsyncpa [#allocation11], 1 }
 0x3d1   :  { %549 = vsyncpa [#allocation11 + $0x1], 1 }
 0x3d2   :  { %550 = vsyncpa [#allocation9], 1 }
 0x3d3   :  { %552 = vsyncpa [#allocation9 + $0x1], 1 }

</bundles_post_ra>
